<compile_context>
chip_gen: v5e
topology: v5e:2x2
jax: 0.10.0
libtpu: 0.0.40
codegen_flags: <defaults>
</compile_context>

<pallas_src>
import numpy as np
import jax
import jax.numpy as jnp
from jax import lax
from jax.experimental import pallas as pl
from jax.experimental.pallas import tpu as pltpu


# ----------------------------------------------------------------------------
# Pallas kernel
# ----------------------------------------------------------------------------
def _esim_attention_kernel(x1_ref, x2_ref, out_ref):
    """A block of Bb batch elements of ESIM cross-attention, resident in VMEM.

    x1_ref:  (Bb, T1, D)    x2_ref:  (Bb, T2, D)
    out_ref: (Bb, T1, 4*D)  = cat([x1, a1, x1*a1, x1-a1], -1)
    """
    x1 = x1_ref[...]                               # (Bb, T1, D) f32
    x2 = x2_ref[...]                               # (Bb, T2, D) f32

    # bf16 operands for the MXU (f32xf32 is multi-pass emulation); f32 accum.
    x1b = x1.astype(jnp.bfloat16)
    x2b = x2.astype(jnp.bfloat16)

    # Batched scores: w[b, i, j] = <x1[b, i], x2[b, j]>   -> (Bb, T1, T2)
    w = lax.dot_general(x1b, x2b, (((2,), (2,)), ((0,), (0,))),
                        preferred_element_type=jnp.float32)

    # Key-side padding bias, computed in-kernel from the already-loaded tile:
    # a key position is padding iff its whole feature vector is exactly zero.
    key_pad = jnp.sum(jnp.abs(x2), axis=-1) == 0.0               # (Bb, T2)
    bias2 = jnp.where(key_pad, jnp.float32(-1e30),
                      jnp.float32(0.0))[:, None, :]              # (Bb, 1, T2)

    # Masked softmax over the key axis; divide via EUP approx reciprocal.
    s = w + bias2
    m = jnp.max(s, axis=-1, keepdims=True)
    e = jnp.exp(s - m)
    p = e * pl.reciprocal(jnp.sum(e, axis=-1, keepdims=True), approx=True)

    # Context: (Bb, T1, T2) @ (Bb, T2, D) -> (Bb, T1, D), bf16 on MXU, f32 acc.
    a1 = lax.dot_general(p.astype(jnp.bfloat16), x2b,
                         (((2,), (1,)), ((0,), (0,))),
                         preferred_element_type=jnp.float32)

    # Single lane-dense 4*D-wide store (128 lanes for D=32) instead of four
    # masked 32-lane slice stores; the concat's lane shuffles ride the XLU.
    out_ref[...] = jnp.concatenate([x1, a1, x1 * a1, x1 - a1], axis=-1)


# ----------------------------------------------------------------------------
# Wrapper
# ----------------------------------------------------------------------------
def _pick_batch_block(batch, target):
    bb = max(1, min(target, batch))
    while batch % bb:
        bb -= 1
    return bb


def esim_attention_forward(x1, x2, *, batch_block=8):
    """ESIM Attention forward.

    x1: (B, T1, D), x2: (B, T2, D); padded time steps are all-zero vectors.
    Returns (out1,) with out1: (B, T1, 4*D), matching the PyTorch module.
    """
    x1 = jnp.asarray(x1, jnp.float32)
    x2 = jnp.asarray(x2, jnp.float32)
    B, T1, D = x1.shape
    B2, T2, D2 = x2.shape
    assert (B, D) == (B2, D2), "x1/x2 batch and feature dims must match"

    bb = _pick_batch_block(B, batch_block)
    grid = (B // bb,)

    out1 = pl.pallas_call(
        _esim_attention_kernel,
        out_shape=jax.ShapeDtypeStruct((B, T1, 4 * D), jnp.float32),
        grid_spec=pltpu.PrefetchScalarGridSpec(
            num_scalar_prefetch=0,
            grid=grid,
            in_specs=[
                pl.BlockSpec((bb, T1, D), lambda i: (i, 0, 0)),
                pl.BlockSpec((bb, T2, D), lambda i: (i, 0, 0)),
            ],
            out_specs=pl.BlockSpec((bb, T1, 4 * D), lambda i: (i, 0, 0)),
        ),
        compiler_params=pltpu.CompilerParams(
            dimension_semantics=("parallel",)),
    )(x1, x2)
    return (out1,)


# ----------------------------------------------------------------------------
# Pure-JAX reference (same intended semantics)
# ----------------------------------------------------------------------------
def reference_forward(x1, x2):
    x1 = jnp.asarray(x1, jnp.float32)
    x2 = jnp.asarray(x2, jnp.float32)
    hp = lax.Precision.HIGHEST
    bias2 = jnp.where(jnp.sum(jnp.abs(x2), -1) == 0.0,
                      -1e30, 0.0)[:, None, :]                     # (B, 1, T2)
    w = jnp.einsum("bid,bjd->bij", x1, x2, precision=hp)          # (B, T1, T2)
    a1 = jnp.einsum("bij,bjd->bid",
                    jax.nn.softmax(w + bias2, axis=-1), x2, precision=hp)
    return jnp.concatenate([x1, a1, x1 * a1, x1 - a1], axis=-1)


# ----------------------------------------------------------------------------
if __name__ == "__main__":
    B, T1, T2, D = 16, 16, 8, 32
    key = jax.random.PRNGKey(0)
    k1, k2 = jax.random.split(key)

    # Round inputs to bf16-representable values so the correctness check is
    # insensitive to the kernel's bf16 MXU operand path.
    x1 = jax.random.normal(k1, (B, T1, D), jnp.float32)
    x2 = jax.random.normal(k2, (B, T2, D), jnp.float32)
    x1 = x1.astype(jnp.bfloat16).astype(jnp.float32)
    x2 = x2.astype(jnp.bfloat16).astype(jnp.float32)

    # Padding convention of the module: padded time steps are exactly zero.
    lens1 = np.array([max(1, T1 - (i % 5)) for i in range(B)], np.int32)
    lens2 = np.array([max(1, T2 - (i % 4)) for i in range(B)], np.int32)
    valid1 = jnp.asarray((np.arange(T1)[None, :] < lens1[:, None])[:, :, None])
    valid2 = jnp.asarray((np.arange(T2)[None, :] < lens2[:, None])[:, :, None])
    x1 = jnp.where(valid1, x1, 0.0)
    x2 = jnp.where(valid2, x2, 0.0)

    (out1,) = esim_attention_forward(x1, x2)
    out1 = jax.block_until_ready(out1)

    ref1 = reference_forward(x1, x2)
    # Tolerance covers bf16 softmax-prob operands + EUP approx reciprocal.
    np.testing.assert_allclose(np.asarray(out1), np.asarray(ref1),
                               rtol=2e-2, atol=2e-2)
    print("KERNEL_OK")
</pallas_src>

<mosaic_0001>
module attributes {stable_mosaic.version = 11 : i64} {
  func.func @_esim_attention_kernel(%arg0: i32, %arg1: memref<8x16x32xf32, #tpu.memory_space<vmem>>, %arg2: memref<8x8x32xf32, #tpu.memory_space<vmem>>, %arg3: memref<8x16x128xf32, #tpu.memory_space<vmem>>) attributes {dimension_semantics = [#tpu.dimension_semantics<parallel>], iteration_bounds = array<i64: 2>, scalar_prefetch = 0 : i64, scratch_operands = 0 : i64, tpu.core_type = #tpu.core_type<tc>, window_params = [{transform_indices = @transform_0, window_bounds = array<i64: 8, 16, 32>}, {transform_indices = @transform_1, window_bounds = array<i64: 8, 8, 32>}, {transform_indices = @transform_2, window_bounds = array<i64: 8, 16, 128>}]} {
    %c0 = arith.constant 0 : index
    %c0_0 = arith.constant 0 : index
    %c0_1 = arith.constant 0 : index
    %0 = vector.load %arg1[%c0, %c0_0, %c0_1] : memref<8x16x32xf32, #tpu.memory_space<vmem>>, vector<8x16x32xf32>
    %c0_2 = arith.constant 0 : index
    %c0_3 = arith.constant 0 : index
    %c0_4 = arith.constant 0 : index
    %1 = vector.load %arg2[%c0_2, %c0_3, %c0_4] : memref<8x8x32xf32, #tpu.memory_space<vmem>>, vector<8x8x32xf32>
    %2 = arith.truncf %0 : vector<8x16x32xf32> to vector<8x16x32xbf16>
    %3 = arith.truncf %1 : vector<8x8x32xf32> to vector<8x8x32xbf16>
    %cst = arith.constant dense<0.000000e+00> : vector<8x16x8xf32>
    %4 = tpu.matmul %2, %3, %cst {dimension_numbers = #tpu.dot_dimension_numbers<[2], [2], [1], [1], [0, 0, 0, 1, 1, 1], [0], [0]>} : vector<8x16x32xbf16>, vector<8x8x32xbf16>, vector<8x16x8xf32> -> vector<8x16x8xf32>
    %5 = math.absf %1 : vector<8x8x32xf32>
    %cst_5 = arith.constant dense<0.000000e+00> : vector<8x8xf32>
    %6 = vector.multi_reduction <add>, %5, %cst_5 [2] : vector<8x8x32xf32> to vector<8x8xf32>
    %cst_6 = arith.constant 0.000000e+00 : f32
    %7 = vector.broadcast %cst_6 : f32 to vector<8x8xf32>
    %8 = arith.cmpf oeq, %6, %7 : vector<8x8xf32>
    %cst_7 = arith.constant -1.000000e+30 : f32
    %cst_8 = arith.constant 0.000000e+00 : f32
    %9 = vector.broadcast %cst_7 : f32 to vector<8x8xf32>
    %10 = vector.broadcast %cst_8 : f32 to vector<8x8xf32>
    %11 = arith.select %8, %9, %10 : vector<8x8xi1>, vector<8x8xf32>
    %12 = vector.shape_cast %11 : vector<8x8xf32> to vector<8x1x8xf32>
    %13 = vector.broadcast %12 : vector<8x1x8xf32> to vector<8x16x8xf32>
    %14 = arith.addf %4, %13 : vector<8x16x8xf32>
    %cst_9 = arith.constant dense<0xFF800000> : vector<8x16xf32>
    %15 = vector.multi_reduction <maximumf>, %14, %cst_9 [2] : vector<8x16x8xf32> to vector<8x16xf32>
    %16 = vector.shape_cast %15 : vector<8x16xf32> to vector<8x16x1xf32>
    %17 = vector.broadcast %16 : vector<8x16x1xf32> to vector<8x16x8xf32>
    %18 = arith.subf %14, %17 : vector<8x16x8xf32>
    %19 = math.exp %18 : vector<8x16x8xf32>
    %cst_10 = arith.constant dense<0.000000e+00> : vector<8x16xf32>
    %20 = vector.multi_reduction <add>, %19, %cst_10 [2] : vector<8x16x8xf32> to vector<8x16xf32>
    %21 = vector.shape_cast %20 : vector<8x16xf32> to vector<8x16x1xf32>
    %22 = tpu.reciprocal %21 {approx = true} : vector<8x16x1xf32> -> vector<8x16x1xf32>
    %23 = vector.broadcast %22 : vector<8x16x1xf32> to vector<8x16x8xf32>
    %24 = arith.mulf %19, %23 : vector<8x16x8xf32>
    %25 = arith.truncf %24 : vector<8x16x8xf32> to vector<8x16x8xbf16>
    %cst_11 = arith.constant dense<0.000000e+00> : vector<8x16x32xf32>
    %26 = tpu.matmul %25, %3, %cst_11 {dimension_numbers = #tpu.dot_dimension_numbers<[2], [1], [1], [2], [0, 0, 0, 1, 1, 2], [0], [0]>} : vector<8x16x8xbf16>, vector<8x8x32xbf16>, vector<8x16x32xf32> -> vector<8x16x32xf32>
    %27 = arith.mulf %0, %26 : vector<8x16x32xf32>
    %28 = arith.subf %0, %26 : vector<8x16x32xf32>
    %29 = tpu.concatenate %0, %26, %27, %28 in 2 : vector<8x16x32xf32>, vector<8x16x32xf32>, vector<8x16x32xf32>, vector<8x16x32xf32> -> vector<8x16x128xf32>
    %c0_12 = arith.constant 0 : index
    %c0_13 = arith.constant 0 : index
    %c0_14 = arith.constant 0 : index
    %30 = vector.load %arg3[%c0_12, %c0_13, %c0_14] : memref<8x16x128xf32, #tpu.memory_space<vmem>>, vector<8x16x128xf32>
    tpu.vector_store %arg3[%c0_12, %c0_13, %c0_14], %29 {strides = array<i32>} : memref<8x16x128xf32, #tpu.memory_space<vmem>>, vector<8x16x128xf32>,
    return
  }
  func.func @transform_0(%arg0: i32) -> (i32, i32, i32) {
    %c0_i32 = arith.constant 0 : i32
    %c0_i32_0 = arith.constant 0 : i32
    %c0_i32_1 = arith.constant 0 : i32
    return %arg0, %c0_i32, %c0_i32_0 : i32, i32, i32
  }
  func.func @transform_1(%arg0: i32) -> (i32, i32, i32) {
    %c0_i32 = arith.constant 0 : i32
    %c0_i32_0 = arith.constant 0 : i32
    %c0_i32_1 = arith.constant 0 : i32
    return %arg0, %c0_i32, %c0_i32_0 : i32, i32, i32
  }
  func.func @transform_2(%arg0: i32) -> (i32, i32, i32) {
    %c0_i32 = arith.constant 0 : i32
    %c0_i32_0 = arith.constant 0 : i32
    %c0_i32_1 = arith.constant 0 : i32
    return %arg0, %c0_i32, %c0_i32_0 : i32, i32, i32
  }
}

</mosaic_0001>

<bundles_post_ra>
// kernel: tpu_custom_call.1
= control target key start
LH: loop header
LB: loop body
LE: loop exit
PB: predicated region body
PF: predicated region fallthrough
CT: control target
= control target key end

     0   :  { %s2394_s0 = inlined_call_operand.hbm [shape: f32[16,16,32], index: 0, kind: input, shape index: {}]   ;;  %s2395_s1 = inlined_call_operand.hbm [shape: f32[16,8,32], index: 1, kind: input, shape index: {}]   ;;  %s2396_s2 = inlined_call_operand.hbm [shape: f32[16,16,128], index: 2, kind: output, shape index: {}]  }
   0x1   :  { %2397 = sst [smem:[#allocation11_spill]] %s2394_s0 }
   0x2   :  { %7 = vsyncpa [#allocation3], 0 }
   0x3   :  { %9 = vsyncpa [#allocation3 + $0x1], 0 }
   0x4   :  { %10 = vsyncpa [#allocation6], 0 }
   0x5   :  { %12 = vsyncpa [#allocation6 + $0x1], 0 }
   0x6   :  { %13 = vsyncpa [#allocation4], 0 }
   0x7   :  { %15 = vsyncpa [#allocation4 + $0x1], 0  ;;  %s1712_s9 = smov 0   ;;  %s1714_s10 = smov 0  }
   0x8   :  { %s1716_s11 = smov 0   ;;  %s1718_s12 = smov 0  }
   0x9 LB: > { %s1733_s13 = sadd.s32 4294967295, %s1687_s12   ;;  %s1377_s14 = sadd.s32 4294967294, %s1687_s12   ;;  %s1687_s12 = sphi %s1718_s12, %s2409_s12   ;;  %s1683_s11 = sphi %s1716_s11, %s2408_s11   ;;  %s1679_s10 = sphi %s1714_s10, %s2407_s10   ;;  %s1675_s9 = sphi %s1712_s9, %s2406_s9  }
   0xa   : > { %s1737_s15 = sadd.s32 1, %s1687_s12   ;;  %s28_s16 = sadd.s32 1, %s1683_s11 }
   0xb   : > { %s25_s17 = ssub.s32 %s1687_s12, %s1737_s15  ;;  %p35_p0 = scmp.ne.s32.totalorder %s1683_s11, %s1679_s10 }
   0xc   : > { %p26_p1 = scmp.eq.s32.totalorder %s25_s17, 0  ;;  %p36_p2 = scmp.eq.s32.totalorder %s1687_s12, 0 }
   0xd   : > { %p41_p3 = scmp.ne.s32.totalorder %s1679_s10, %s1675_s9  ;;  %p42_p4 = scmp.eq.s32.totalorder %s1733_s13, 0 }
   0xe   : > { %s1749_s18 = scalar_select %p26_p1, %s1683_s11, %s28_s16  }
   0xf   : > { %p1751_p5 = por %p36_p2, %p35_p0  ;;  %p1755_p6 = por %p42_p4, %p41_p3 }
  0x10   : > { %p91_p7 = scmp.eq.s32.totalorder %s1733_s13, 1  ;;  %p97_p8 = scmp.eq.s32.totalorder %s1377_s14, 1 }
  0x11   : > { %p1435_p10 = scmp.lt.s32.totalorder %s1687_s12, 2  ;;  %s1771_s23 = sand.u32 1, %s1683_s11  }
  0x12   : > { %p1762_p11 = por %p91_p7, %p35_p0  ;;  %p1766_p12 = por %p97_p8, %p41_p3 }
  0x13   : > { %s1414_s24 = sshll.u32 %s1687_s12, 7  ;;  %s1380_s25 = sshll.u32 %s1771_s23, 7 }
  0x14   : > { %s2402_s0 = sld [smem:[#allocation11_spill]]  ;;  %s121_s30 = scalar_lea.vmem [#allocation2], %s1380_s25 }
  0x15   : > { %s130_s3 = sshll.u32 %s121_s30, 4  ;;  %p1780_p13 = pnand %p1435_p10, %p1751_p5  ;;  %s131_s3 = int_to_ptr.vmem [resolvable:$true] %s130_s3 }
  0x16   : > { %p1387_p0 = scmp.ge.s32.totalorder %s1687_s12, 1  ;;  %p160_p1 = scmp.lt.s32.totalorder %s1687_s12, 3 }
  0x17   : > { %s118_s5 = scalar_lea.sflag [#allocation3], %s1771_s23  ;;  %p1561_p3 = pneg %p1780_p13 }
  0x1a   : > { %s127_s28 = scalar_lea.hbm %s2402_s0, %s1414_s24  ;;  %s1564_s16 = scalar_lea.hbm %s2402_s0, 256 }
  0x1b   : > { %s128_s29 = sshll.u32 %s127_s28, 4  ;;  %s129_s29 = int_to_ptr.hbm [resolvable:$true] %s128_s29 }
  0x1c   : > { %s1557_s6 = sshra.s32 %s129_s29, 4  ;;  %s1558_s6 = int_to_ptr.hbm [resolvable:$true] %s1557_s6 }
  0x1d   : > { %s1559_s7 = scalar_lea.hbm %s1558_s6, 128  ;;  %p1565_p5 = scmp.lt.s32.totalorder %s1558_s6, %s2402_s0 }
  0x1e   : > { %p1560_p2 = scmp.ne.s32.totalorder %s1558_s6, %s1559_s7  ;;  %p1566_p8 = scmp.lt.s32.totalorder %s1564_s16, %s1559_s7 }
  0x20   : > { %p1562_p4 = pnand %p1561_p3, %p1560_p2  ;;  %p1567_p10 = por %p1566_p8, %p1565_p5 }
  0x22   : > { %p1563_p7 = pneg %p1562_p4 }
  0x24   : > { %p1568_p9 = pnand %p1567_p10, %p1563_p7 }
  0x26   : > { %1571 = shalt.err (!%p1568_p9)
}
  0x27   : > { %s1689_s24 = smov 128   ;;  %s1690_s25 = smov 8  }
  0x28   : > { %1427 = dma.hbm_to_vmem [thread:$0]  (!%p1780_p13), %s129_s29, 2048, %s131_s3, %s118_s5, %s1689_s24, %s1689_s24, %s1690_s25  }
  0x29   : > { %p1804_p2 = pnand %p1387_p0, %p160_p1  ;;  %s1384_s27 = sshll.u32 %s1771_s23, 6 }
  0x2a   : > { %s1415_s28 = sshll.u32 %s1687_s12, 6  ;;  %s144_s14 = scalar_lea.vmem [#allocation5], %s1384_s27 }
  0x2b   : > { %s149_s7 = scalar_lea.hbm %s2395_s1, %s1415_s28  ;;  %s152_s16 = sshll.u32 %s144_s14, 4  ;;  %s153_s16 = int_to_ptr.vmem [resolvable:$true] %s152_s16 }
  0x2c   : > { %s150_s8 = sshll.u32 %s149_s7, 4  ;;  %s141_s17 = scalar_lea.sflag [#allocation6], %s1771_s23  ;;  %s151_s8 = int_to_ptr.hbm [resolvable:$true] %s150_s8 }
  0x2d   : > { %s1587_s19 = sshra.s32 %s151_s8, 4  ;;  %s1594_s0 = scalar_lea.hbm %s2395_s1, 128  ;;  %s1588_s19 = int_to_ptr.hbm [resolvable:$true] %s1587_s19 }
  0x2e   : > { %s1589_s29 = scalar_lea.hbm %s1588_s19, 64  ;;  %p1595_p4 = scmp.lt.s32.totalorder %s1588_s19, %s2395_s1 }
  0x2f   : > { %p1590_p9 = scmp.ne.s32.totalorder %s1588_s19, %s1589_s29  ;;  %p1596_p7 = scmp.lt.s32.totalorder %s1594_s0, %s1589_s29 }
  0x31   : > { %p1592_p0 = pnand %p1590_p9, %p1561_p3  ;;  %p1597_p5 = por %p1596_p7, %p1595_p4 }
  0x33   : > { %p1593_p1 = pneg %p1592_p0 }
  0x35   : > { %p1598_p8 = pnand %p1597_p5, %p1593_p1 }
  0x37   : > { %1601 = shalt.err (!%p1598_p8)
}
  0x38   : > { %1430 = dma.hbm_to_vmem [thread:$0]  (!%p1780_p13), %s151_s8, 1024, %s153_s16, %s141_s17, %s1689_s24, %s1689_s24, %s1690_s25  }
  0x39   : > { %164 = sbr.rel (%p1804_p2) target bundleno = 855 (0x357), region = 28  ;;  %s1828_s23 = sand.u32 (!%p1804_p2), 1, %s1679_s10  }
  0x3a   : > { %s1388_s27 = sshll.u32 (!%p1804_p2), %s1828_s23, 7  ;;  %s167_s6 = scalar_lea.sflag (!%p1804_p2), [#allocation3], %s1828_s23 }
  0x3b   : > { %s1834_s0 = scalar_lea.vmem (!%p1804_p2), [#allocation2], %s1388_s27 }
  0x3e   : > { %1662 = dma.done.wait (%p1755_p6), %s167_s6, 2048  }
  0x3f   : > { %1664 = vsyncadd (%p1755_p6), %s167_s6, 4294965248  ;;  %s1389_s4 = sshll.u32 %s1828_s23, 6  ;;  %s177_s24 = scalar_lea.sflag [#allocation6], %s1828_s23 }
  0x40   : > { %s1842_s25 = scalar_lea.vmem [#allocation5], %s1389_s4 }
  0x41   : > { %1666 = dma.done.wait (%p1755_p6), %s177_s24, 1024  }
  0x42   : > { %1668 = vsyncadd (%p1755_p6), %s177_s24, 4294966272  ;;  %v227_v0 = vld [vmem:[%s1842_s25] sm:$0xff]  ;;  %vm267_vm0 = vcmask 261120   ;;  %v1850_v1 = vld [vmem:[%s1842_s25 + $0x8] sm:$0xff]  ;;  %vm588_vm5 = vcmask 64512   ;;  %vm789_vm10 = vcmask 1043456  }
  0x43   : > { %v229_v2 = vld [vmem:[%s1842_s25 + $0x10] sm:$0xff]  ;;  %v1853_v3 = vpack.c.bf16 %v227_v0, %v227_v0  ;;  %v1857_v4 = vpack.c.bf16 %v1850_v1, %v1850_v1  ;;  %v230_v6 = vld [vmem:[%s1842_s25 + $0x18] sm:$0xff]  ;;  %v259_v7 = vand.u32 2147483647, %v227_v0  ;;  %v1863_v8 = vld [vmem:[%s1834_s0] sm:$0xff]  ;;  %s1692_s20 = smov 32  }
  0x44   : > { %v1859_v5 = vpack.c.bf16 %v229_v2, %v229_v2  ;;  %v1866_v9 = vld [vmem:[%s1834_s0 + $0x8] sm:$0xff]  ;;  %v1868_v10 = vpack.c.bf16 %v230_v6, %v230_v6  ;;  %v235_v11 = vpack.c.bf16 %v1863_v8, %v1863_v8  ;;  %v1875_v13 = vld [vmem:[%s1834_s0 + $0x10] sm:$0xff]  ;;  %v1878_v14 = vld [vmem:[%s1834_s0 + $0x18] sm:$0xff]  ;;  %v261_v16 = vand.u32 2147483647, %v229_v2  ;;  %s1693_s26 = smov 64  }
  0x45   : > { %v236_v12 = vpack.c.bf16 %v1866_v9, %v1866_v9  ;;  %v1881_v15 = vld [vmem:[%s1834_s0 + $0x20] sm:$0xff]  ;;  %v334_v17 = vsel %vm267_vm0, %v1853_v3, 0  ;;  %v368_v18 = vsel %vm267_vm0, %v1857_v4, 0  ;;  %v268_v20 = vsel %vm267_vm0, %v259_v7, 0.0  ;;  %v1891_v21 = vld [vmem:[%s1834_s0 + $0x28] sm:$0xff]  ;;  %v1894_v22 = vld [vmem:[%s1834_s0 + $0x30] sm:$0xff] }
  0x46   : > { %v402_v19 = vsel %vm267_vm0, %v1859_v5, 0  ;;  %343 = vmatpush.bf16.xpose.msra.mxu0 %v334_v17  ;;  %377 = vmatpush.bf16.xpose.msra.mxu1 %v368_v18  ;;  %v436_v23 = vsel %vm267_vm0, %v1868_v10, 0  ;;  %v310_v24 = vunpack.c.l.b16 %v235_v11  ;;  %v237_v26 = vpack.c.bf16 %v1875_v13, %v1875_v13  ;;  %v1901_v27 = vld [vmem:[%s1834_s0 + $0x38] sm:$0xff]  ;;  %v233_v32 = vld [vmem:[%s1842_s25 + $0x30] sm:$0xff]  ;;  %v231_v49 = vld [vmem:[%s1842_s25 + $0x20] sm:$0xff]  ;;  %s1694_s7 = smov 96  }
  0x47   : > { %v311_v25 = vunpack.c.l.b16 %v236_v12  ;;  %411 = vmatpush.bf16.xpose.msra.mxu2 %v402_v19  ;;  %445 = vmatpush.bf16.xpose.msra.mxu3 %v436_v23  ;;  %v238_v28 = vpack.c.bf16 %v1878_v14, %v1878_v14  ;;  %v239_v29 = vpack.c.bf16 %v1881_v15, %v1881_v15  ;;  %v240_v30 = vpack.c.bf16 %v1891_v21, %v1891_v21  ;;  %v1912_v33 = vld [vmem:[%s1842_s25 + $0x38] sm:$0xff]  ;;  %v1931_v53 = vld [vmem:[%s1834_s0 + $0x60] sm:$0xff]  ;;  %v232_v54 = vld [vmem:[%s1842_s25 + $0x28] sm:$0xff]  ;;  %s2285_s8 = scalar_lea.vmem [#allocation7], %s1388_s27  ;;  %s1417_s14 = sshll.u32 %s1733_s13, 7 }
  0x48   : > { %v274_v31 = vsel %vm267_vm0, %v261_v16, 0.0  ;;  %269 = vadd.xlane.f32.xlu1 %v268_v20  ;;  %v352_v35 = vunpack.c.l.b16 %v237_v26  ;;  %v241_v36 = vpack.c.bf16 %v1894_v22, %v1894_v22  ;;  %v242_v37 = vpack.c.bf16 %v1901_v27, %v1901_v27  ;;  %v1939_v57 = vld [vmem:[%s1834_s0 + $0x40] sm:$0xff]  ;;  %v1942_v58 = vld [vmem:[%s1834_s0 + $0x48] sm:$0xff]  ;;  %v1950_v60 = vld [vmem:[%s1834_s0 + $0x70] sm:$0xff]  ;;  %s1277_s19 = scalar_lea.hbm %s2396_s2, %s1417_s14  ;;  %s1278_s13 = sshll.u32 %s2285_s8, 4  ;;  %s1279_s13 = int_to_ptr.vmem [resolvable:$true] %s1278_s13 }
  0x49   : > { %v312_v34 = vpack.c.b16 %v311_v25, %v310_v24  ;;  %275 = vadd.xlane.f32.xlu0 %v274_v31  ;;  %v353_v38 = vunpack.c.l.b16 %v238_v28  ;;  %v386_v39 = vunpack.c.l.b16 %v239_v29  ;;  %v387_v40 = vunpack.c.l.b16 %v240_v30  ;;  %v1947_v59 = vld [vmem:[%s1834_s0 + $0x68] sm:$0xff]  ;;  %v1957_v63 = vld [vmem:[%s1834_s0 + $0x78] sm:$0xff]  ;;  %s1280_s29 = sshll.u32 %s1277_s19, 4  ;;  %s1265_s3 = scalar_lea.sflag [#allocation4], %s1828_s23  ;;  %s1281_s29 = int_to_ptr.hbm [resolvable:$true] %s1280_s29 }
  0x4a   : > { %v260_v41 = vand.u32 2147483647, %v1850_v1  ;;  %v420_v42 = vunpack.c.l.b16 %v241_v36  ;;  %v421_v43 = vunpack.c.l.b16 %v242_v37  ;;  %v1919_v44 = vpack.c.bf16 %v233_v32, %v233_v32  ;;  %v1962_v1 = vld [vmem:[%s1834_s0 + $0x50] sm:$0xff]  ;;  %v1965_v2 = vld [vmem:[%s1834_s0 + $0x58] sm:$0xff]  ;;  %s1631_s5 = sshra.s32 %s1281_s29, 4  ;;  %s1637_s6 = scalar_lea.hbm %s2396_s2, 256  ;;  %s1632_s5 = int_to_ptr.hbm [resolvable:$true] %s1631_s5 }
  0x4b   : > { %v1923_v45 = vpack.c.bf16 %v1912_v33, %v1912_v33  ;;  %v354_v46 = vpack.c.b16 %v353_v38, %v352_v35  ;;  %v388_v47 = vpack.c.b16 %v387_v40, %v386_v39  ;;  %v262_v48 = vand.u32 2147483647, %v230_v6  ;;  %s1633_s30 = scalar_lea.hbm %s1632_s5, 128  ;;  %p1638_p10 = scmp.lt.s32.totalorder %s1632_s5, %s2396_s2 }
  0x4c   : > { %v422_v50 = vpack.c.b16 %v421_v43, %v420_v42  ;;  %v538_v51 = vsel %vm267_vm0, %v1919_v44, 0  ;;  %v271_v55 = vsel %vm267_vm0, %v260_v41, 0.0  ;;  %v1952_v61 = vpack.c.bf16 %v231_v49, %v231_v49  ;;  %p1634_p6 = scmp.ne.s32.totalorder %s1632_s5, %s1633_s30  ;;  %p1639_p2 = scmp.lt.s32.totalorder %s1637_s6, %s1633_s30 }
  0x4d   : > { %v572_v52 = vsel %vm267_vm0, %v1923_v45, 0  ;;  %1391 = vmatmul.msk.bf16.vlgmr.msra.gmra.mxu0 %vm267_vm0, %v312_v34  ;;  %1392 = vmatmul.msk.bf16.vlgmr.msra.gmra.mxu1 %vm267_vm0, %v354_v46  ;;  %v277_v56 = vsel %vm267_vm0, %v262_v48, 0.0  ;;  %v247_v62 = vpack.c.bf16 %v1931_v53, %v1931_v53  ;;  %v1959_v0 = vpack.c.bf16 %v232_v54, %v232_v54 }
  0x4e   : > { %1393 = vmatmul.msk.bf16.vlgmr.msra.gmra.mxu2 %vm267_vm0, %v388_v47  ;;  %1394 = vmatmul.msk.bf16.vlgmr.msra.gmra.mxu3 %vm267_vm0, %v422_v50  ;;  %v470_v6 = vsel %vm267_vm0, %v1952_v61, 0  ;;  %v243_v7 = vpack.c.bf16 %v1939_v57, %v1939_v57  ;;  %v244_v11 = vpack.c.bf16 %v1942_v58, %v1942_v58  ;;  %v265_v12 = vand.u32 2147483647, %v233_v32  ;;  %p1635_p13 = pnand %p1634_p6, %p1762_p11  ;;  %p1640_p9 = por %p1639_p2, %p1638_p10 }
  0x4f   : > { %547 = vmatpush.bf16.xpose.msrb.mxu2 %v538_v51  ;;  %581 = vmatpush.bf16.xpose.msrb.mxu3 %v572_v52  ;;  %v248_v16 = vpack.c.bf16 %v1947_v59, %v1947_v59  ;;  %v249_v17 = vpack.c.bf16 %v1950_v60, %v1950_v60  ;;  %v504_v18 = vsel %vm267_vm0, %v1959_v0, 0  ;;  %v263_v19 = vand.u32 2147483647, %v231_v49 }
  0x50   : > { %272 = vadd.xlane.f32.xlu1 %v271_v55  ;;  %479 = vmatpush.bf16.xpose.msrb.mxu0 %v470_v6  ;;  %v250_v20 = vpack.c.bf16 %v1957_v63, %v1957_v63  ;;  %v286_v23 = vsel %vm267_vm0, %v265_v12, 0.0  ;;  %v245_v24 = vpack.c.bf16 %v1962_v1, %v1962_v1  ;;  %v246_v25 = vpack.c.bf16 %v1965_v2, %v1965_v2  ;;  %p1636_p3 = pneg %p1635_p13 }
  0x51   : > { %278 = vadd.xlane.f32.xlu0 %v277_v56  ;;  %513 = vmatpush.bf16.xpose.msrb.mxu1 %v504_v18  ;;  %v264_v26 = vand.u32 2147483647, %v232_v54  ;;  %v454_v28 = vunpack.c.l.b16 %v243_v7  ;;  %v455_v29 = vunpack.c.l.b16 %v244_v11  ;;  %v266_v30 = vand.u32 2147483647, %v1912_v33 }
  0x52   : > { %287 = vadd.xlane.f32.xlu2 %v286_v23  ;;  %v280_v31 = vsel %vm267_vm0, %v263_v19, 0.0  ;;  %v488_v32 = vunpack.c.l.b16 %v245_v24  ;;  %v489_v34 = vunpack.c.l.b16 %v246_v25  ;;  %v522_v36 = vunpack.c.l.b16 %v247_v62  ;;  %p1641_p0 = pnand %p1640_p9, %p1636_p3 }
  0x53   : > { %v283_v35 = vsel %vm267_vm0, %v264_v26, 0.0  ;;  %v523_v37 = vunpack.c.l.b16 %v248_v16  ;;  %v556_v38 = vunpack.c.l.b16 %v249_v17  ;;  %v557_v39 = vunpack.c.l.b16 %v250_v20 }
  0x54   : > { %v289_v40 = vsel %vm267_vm0, %v266_v30, 0.0  ;;  %v456_v41 = vpack.c.b16 %v455_v29, %v454_v28  ;;  %v490_v42 = vpack.c.b16 %v489_v34, %v488_v32  ;;  %v314_v48 = vlaneseq }
  0x55   : > { %v524_v43 = vpack.c.b16 %v523_v37, %v522_v36  ;;  %v558_v46 = vpack.c.b16 %v557_v39, %v556_v38  ;;  %v1691_v51 = vmov 0.0   ;;  %vm1214_vm11 = vcmask 523264  }
  0x56   : > { %v1994_v50 = vand.u32 127, %v314_v48  ;;  %vm1231_vm12 = vcmask 785408  }
  0x58   : > { %284 = vadd.xlane.f32.xlu1 %v283_v35 }
  0x59   : > { %281 = vadd.xlane.f32.xlu0 %v280_v31 }
  0x5a   : > { %290 = vadd.xlane.f32.xlu2 %v289_v40 }
  0x5d   : > { %1395 = vmatmul.msk.bf16.vlgmr.msrb.gmra.mxu0 %vm267_vm0, %v456_v41  ;;  %1396 = vmatmul.msk.bf16.vlgmr.msrb.gmra.mxu1 %vm267_vm0, %v490_v42 }
  0x5e   : > { %1397 = vmatmul.msk.bf16.vlgmr.msrb.gmra.mxu2 %vm267_vm0, %v524_v43  ;;  %1398 = vmatmul.msk.bf16.vlgmr.msrb.gmra.mxu3 %vm267_vm0, %v558_v46 }
  0xbb   : > { %v270_v33 = vpop.xlane.xlu1 %269 }
  0xbc   : > { %v276_v47 = vpop.xlane.xlu0 %275  ;;  %vm292_vm1 = vcmp.eq.f32.partialorder %v270_v33, 0.0 }
  0xbd   : > { %v300_v52 = vsel %vm292_vm1, -1e+30, %v1691_v51  ;;  %vm294_vm3 = vcmp.eq.f32.partialorder %v276_v47, 0.0 }
  0xbe   : > { %v316_v56 = vperm.slane %v300_v52, %v1994_v50  ;;  %v302_v11 = vsel %vm294_vm3, -1e+30, %v1691_v51 }
  0xbf   : > { %v390_v20 = vperm.slane %v302_v11, %v1994_v50 }
  0xc3   : > { %v273_v49 = vpop.xlane.xlu1 %272 }
  0xc4   : > { %vm293_vm2 = vcmp.eq.f32.partialorder %v273_v49, 0.0  ;;  %v279_v55 = vpop.xlane.xlu0 %278 }
  0xc5   : > { %v301_v54 = vsel %vm293_vm2, -1e+30, %v1691_v51  ;;  %vm295_vm4 = vcmp.eq.f32.partialorder %v279_v55, 0.0  ;;  %v288_v24 = vpop.xlane.xlu2 %287 }
  0xc6   : > { %v356_v62 = vperm.slane %v301_v54, %v1994_v50  ;;  %v303_v17 = vsel %vm295_vm4, -1e+30, %v1691_v51  ;;  %vm298_vm7 = vcmp.eq.f32.partialorder %v288_v24, 0.0 }
  0xc7   : > { %v424_v23 = vperm.slane %v303_v17, %v1994_v50  ;;  %v306_v43 = vsel %vm298_vm7, -1e+30, %v1691_v51 }
  0xc8   : > { %v526_v52 = vperm.slane %v306_v43, %v1994_v50 }
  0xca   : > { %v345_v6 = vpop.f32.mrf.mxu0  ;;  %v379_v7 = vpop.f32.mrf.mxu1 }
  0xcb   : > { %v2001_v12 = vadd.f32 %v345_v6, %v316_v56  ;;  %v2003_v16 = vadd.f32 %v379_v7, %v356_v62  ;;  %v285_v6 = vpop.xlane.xlu1 %284 }
  0xcc   : > { %v282_v30 = vpop.xlane.xlu0 %281  ;;  %vm297_vm9 = vcmp.eq.f32.partialorder %v285_v6, 0.0 }
  0xcd   : > { %v595_v18 = vsel %vm588_vm5, %v2003_v16, -inf  ;;  %v589_v19 = vsel %vm588_vm5, %v2001_v12, -inf  ;;  %vm296_vm6 = vcmp.eq.f32.partialorder %v282_v30, 0.0  ;;  %v291_v37 = vpop.xlane.xlu2 %290 }
  0xce   : > { %596 = vmax.xlane.f32.xlu2 %v595_v18  ;;  %590 = vmax.xlane.f32.xlu0 %v589_v19  ;;  %v304_v36 = vsel %vm296_vm6, -1e+30, %v1691_v51  ;;  %vm299_vm8 = vcmp.eq.f32.partialorder %v291_v37, 0.0 }
  0xcf   : > { %v458_v46 = vperm.slane %v304_v36, %v1994_v50  ;;  %v307_v55 = vsel %vm299_vm8, -1e+30, %v1691_v51 }
  0xd0   : > { %v560_v18 = vperm.slane %v307_v55, %v1994_v50 }
  0xd1   : > { %v413_v25 = vpop.f32.mrf.mxu2  ;;  %v447_v26 = vpop.f32.mrf.mxu3 }
  0xd2   : > { %v2012_v28 = vadd.f32 %v413_v25, %v390_v20  ;;  %v2014_v29 = vadd.f32 %v447_v26, %v424_v23  ;;  %v347_v31 = vpop.f32.mrf.mxu0  ;;  %v381_v40 = vpop.f32.mrf.mxu1  ;;  %v305_v25 = vsel %vm297_vm9, -1e+30, %v1691_v51 }
  0xd3   : > { %v2020_v35 = vadd.f32 %v347_v31, %v316_v56  ;;  %v2039_v56 = vadd.f32 %v381_v40, %v356_v62  ;;  %v492_v36 = vperm.slane %v305_v25, %v1994_v50 }
  0xd4   : > { %v607_v32 = vsel %vm588_vm5, %v2014_v29, -inf  ;;  %v601_v34 = vsel %vm588_vm5, %v2012_v28, -inf }
  0xd5   : > { %608 = vmax.xlane.f32.xlu1 %v607_v32  ;;  %v592_v33 = vsel %vm588_vm5, %v2020_v35, -inf  ;;  %v598_v24 = vsel %vm588_vm5, %v2039_v56, -inf }
  0xd6   : > { %602 = vmax.xlane.f32.xlu2 %v601_v34 }
  0xd9   : > { %v415_v38 = vpop.f32.mrf.mxu2  ;;  %v449_v39 = vpop.f32.mrf.mxu3 }
  0xda   : > { %v2023_v41 = vadd.f32 %v415_v38, %v390_v20  ;;  %v2025_v42 = vadd.f32 %v449_v39, %v424_v23  ;;  %v481_v48 = vpop.f32.mrf.mxu0  ;;  %v515_v19 = vpop.f32.mrf.mxu1 }
  0xdb   : > { %v2036_v54 = vadd.f32 %v481_v48, %v458_v46  ;;  %v2066_v43 = vadd.f32 %v515_v19, %v492_v36 }
  0xdc   : > { %v604_v47 = vsel %vm588_vm5, %v2023_v41, -inf  ;;  %v610_v49 = vsel %vm588_vm5, %v2025_v42, -inf }
  0xdd   : > { %593 = vmax.xlane.f32.xlu1 %v592_v33  ;;  %605 = vmax.xlane.f32.xlu0 %v604_v47  ;;  %v613_v20 = vsel %vm588_vm5, %v2036_v54, -inf  ;;  %v619_v50 = vsel %vm588_vm5, %v2066_v43, -inf }
  0xde   : > { %611 = vmax.xlane.f32.xlu2 %v610_v49 }
  0xe1   : > { %v549_v7 = vpop.f32.mrf.mxu2  ;;  %v583_v11 = vpop.f32.mrf.mxu3 }
  0xe2   : > { %v2041_v17 = vadd.f32 %v549_v7, %v526_v52  ;;  %v2050_v62 = vadd.f32 %v583_v11, %v560_v18  ;;  %v483_v37 = vpop.f32.mrf.mxu0  ;;  %v517_v40 = vpop.f32.mrf.mxu1 }
  0xe3   : > { %v2064_v51 = vadd.f32 %v483_v37, %v458_v46  ;;  %v2068_v33 = vadd.f32 %v517_v40, %v492_v36 }
  0xe4   : > { %v625_v23 = vsel %vm588_vm5, %v2041_v17, -inf  ;;  %v631_v34 = vsel %vm588_vm5, %v2050_v62, -inf }
  0xe5   : > { %626 = vmax.xlane.f32.xlu1 %v625_v23  ;;  %599 = vmax.xlane.f32.xlu0 %v598_v24  ;;  %v616_v47 = vsel %vm588_vm5, %v2064_v51, -inf  ;;  %v622_v48 = vsel %vm588_vm5, %v2068_v33, -inf }
  0xe6   : > { %614 = vmax.xlane.f32.xlu2 %v613_v20 }
  0xe9   : > { %v585_v26 = vpop.f32.mrf.mxu3  ;;  %v551_v30 = vpop.f32.mrf.mxu2 }
  0xea   : > { %v2053_v31 = vadd.f32 %v585_v26, %v560_v18  ;;  %v2055_v32 = vadd.f32 %v551_v30, %v526_v52 }
  0xec   : > { %v634_v38 = vsel %vm588_vm5, %v2053_v31, -inf  ;;  %v628_v39 = vsel %vm588_vm5, %v2055_v32, -inf }
  0xed   : > { %635 = vmax.xlane.f32.xlu1 %v634_v38  ;;  %632 = vmax.xlane.f32.xlu0 %v631_v34 }
  0xee   : > { %629 = vmax.xlane.f32.xlu2 %v628_v39 }
  0xf5   : > { %620 = vmax.xlane.f32.xlu1 %v619_v50  ;;  %617 = vmax.xlane.f32.xlu0 %v616_v47 }
  0xf6   : > { %623 = vmax.xlane.f32.xlu2 %v622_v48 }
 0x141   : > { %v597_v49 = vpop.xlane.xlu2 %596  ;;  %v591_v52 = vpop.xlane.xlu0 %590 }
 0x142   : > { %v639_v46 = vsub.f32 %v2003_v16, %v597_v49  ;;  %v637_v55 = vsub.f32 %v2001_v12, %v591_v52 }
 0x144   : > { %v657_v6 = vmul.f32 1.442695, %v639_v46  ;;  %v653_v7 = vmul.f32 1.442695, %v637_v55 }
 0x146   : > { %1477 = vpow2.f32 %v657_v6 }
 0x147   : > { %1479 = vpow2.f32 %v653_v7 }
 0x148   : > { %v609_v11 = vpop.xlane.xlu1 %608 }
 0x149   : > { %v643_v18 = vsub.f32 %v2014_v29, %v609_v11  ;;  %v603_v19 = vpop.xlane.xlu2 %602 }
 0x14a   : > { %v641_v20 = vsub.f32 %v2012_v28, %v603_v19 }
 0x14b   : > { %v665_v23 = vmul.f32 1.442695, %v643_v18 }
 0x14c   : > { %v2080_v24 = vpop.eup %1477  ;;  %v661_v25 = vmul.f32 1.442695, %v641_v20 }
 0x14d   : > { %v2082_v26 = vpop.eup %1479  ;;  %1481 = vpow2.f32 %v665_v23  ;;  %v691_v12 = vsel %vm588_vm5, %v2080_v24, 0.0 }
 0x14e   : > { %1483 = vpow2.f32 %v661_v25  ;;  %692 = vadd.xlane.f32.xlu0 %v691_v12  ;;  %v685_v16 = vsel %vm588_vm5, %v2082_v26, 0.0 }
 0x14f   : > { %686 = vadd.xlane.f32.xlu1 %v685_v16 }
 0x150   : > { %v594_v29 = vpop.xlane.xlu1 %593  ;;  %v606_v30 = vpop.xlane.xlu0 %605 }
 0x151   : > { %v638_v28 = vsub.f32 %v2020_v35, %v594_v29  ;;  %v642_v34 = vsub.f32 %v2023_v41, %v606_v30  ;;  %v612_v36 = vpop.xlane.xlu2 %611 }
 0x152   : > { %v644_v37 = vsub.f32 %v2025_v42, %v612_v36 }
 0x153   : > { %v2091_v38 = vpop.eup %1481  ;;  %v655_v39 = vmul.f32 1.442695, %v638_v28  ;;  %v663_v40 = vmul.f32 1.442695, %v642_v34 }
 0x154   : > { %v2093_v50 = vpop.eup %1483  ;;  %v667_v47 = vmul.f32 1.442695, %v644_v37  ;;  %v703_v48 = vsel %vm588_vm5, %v2091_v38, 0.0 }
 0x155   : > { %1485 = vpow2.f32 %v655_v39  ;;  %704 = vadd.xlane.f32.xlu2 %v703_v48  ;;  %v697_v35 = vsel %vm588_vm5, %v2093_v50, 0.0 }
 0x156   : > { %1487 = vpow2.f32 %v663_v40  ;;  %698 = vadd.xlane.f32.xlu0 %v697_v35 }
 0x157   : > { %1489 = vpow2.f32 %v667_v47 }
 0x158   : > { %v627_v41 = vpop.xlane.xlu1 %626  ;;  %v600_v42 = vpop.xlane.xlu0 %599 }
 0x159   : > { %v649_v49 = vsub.f32 %v2041_v17, %v627_v41  ;;  %v640_v52 = vsub.f32 %v2039_v56, %v600_v42  ;;  %v615_v46 = vpop.xlane.xlu2 %614 }
 0x15a   : > { %v645_v55 = vsub.f32 %v2036_v54, %v615_v46 }
 0x15b   : > { %v2102_v6 = vpop.eup %1485  ;;  %v677_v7 = vmul.f32 1.442695, %v649_v49  ;;  %v659_v11 = vmul.f32 1.442695, %v640_v52 }
 0x15c   : > { %v2104_v18 = vpop.eup %1487  ;;  %v669_v19 = vmul.f32 1.442695, %v645_v55  ;;  %v688_v20 = vsel %vm588_vm5, %v2102_v6, 0.0 }
 0x15d   : > { %v2108_v23 = vpop.eup %1489  ;;  %1491 = vpow2.f32 %v677_v7  ;;  %689 = vadd.xlane.f32.xlu2 %v688_v20  ;;  %v700_v56 = vsel %vm588_vm5, %v2104_v18, 0.0 }
 0x15e   : > { %1493 = vpow2.f32 %v659_v11  ;;  %701 = vadd.xlane.f32.xlu1 %v700_v56  ;;  %v706_v54 = vsel %vm588_vm5, %v2108_v23, 0.0 }
 0x15f   : > { %1495 = vpow2.f32 %v669_v19  ;;  %707 = vadd.xlane.f32.xlu0 %v706_v54 }
 0x160   : > { %v636_v17 = vpop.xlane.xlu1 %635  ;;  %v633_v25 = vpop.xlane.xlu0 %632 }
 0x161   : > { %v652_v12 = vsub.f32 %v2053_v31, %v636_v17  ;;  %v651_v16 = vsub.f32 %v2050_v62, %v633_v25  ;;  %v630_v29 = vpop.xlane.xlu2 %629 }
 0x162   : > { %v650_v30 = vsub.f32 %v2055_v32, %v630_v29  ;;  %v838_v29 = vsel %vm789_vm10, %v1859_v5, 0  ;;  %v958_v5 = vsel %vm789_vm10, %v1923_v45, 0 }
 0x163   : > { %v2117_v28 = vpop.eup %1491  ;;  %v683_v34 = vmul.f32 1.442695, %v652_v12  ;;  %v681_v36 = vmul.f32 1.442695, %v651_v16  ;;  %v790_v16 = vsel %vm789_vm10, %v1853_v3, 0  ;;  %847 = vmatpush.bf16.msra.mxu2 %v838_v29  ;;  %v934_v3 = vsel %vm789_vm10, %v1919_v44, 0 }
 0x164   : > { %v2119_v37 = vpop.eup %1493  ;;  %v679_v39 = vmul.f32 1.442695, %v650_v30  ;;  %v721_v40 = vsel %vm588_vm5, %v2117_v28, 0.0  ;;  %799 = vmatpush.bf16.msra.mxu0 %v790_v16  ;;  %v862_v30 = vsel %vm789_vm10, %v1868_v10, 0  ;;  %v886_v44 = vsel %vm789_vm10, %v1952_v61, 0 }
 0x165   : > { %v2123_v47 = vpop.eup %1495  ;;  %1497 = vpow2.f32 %v683_v34  ;;  %722 = vadd.xlane.f32.xlu2 %v721_v40  ;;  %v694_v62 = vsel %vm588_vm5, %v2119_v37, 0.0  ;;  %v814_v34 = vsel %vm789_vm10, %v1857_v4, 0  ;;  %871 = vmatpush.bf16.msra.mxu3 %v862_v30 }
 0x166   : > { %1499 = vpow2.f32 %v681_v36  ;;  %695 = vadd.xlane.f32.xlu1 %v694_v62  ;;  %v709_v31 = vsel %vm588_vm5, %v2123_v47, 0.0  ;;  %823 = vmatpush.bf16.msra.mxu1 %v814_v34 }
 0x167   : > { %1501 = vpow2.f32 %v679_v39  ;;  %710 = vadd.xlane.f32.xlu0 %v709_v31  ;;  %943 = vmatpush.bf16.msrb.mxu2 %v934_v3 }
 0x168   : > { %v621_v32 = vpop.xlane.xlu1 %620  ;;  %v618_v48 = vpop.xlane.xlu0 %617  ;;  %895 = vmatpush.bf16.msrb.mxu0 %v886_v44 }
 0x169   : > { %v647_v35 = vsub.f32 %v2066_v43, %v621_v32  ;;  %v646_v41 = vsub.f32 %v2064_v51, %v618_v48  ;;  %v624_v42 = vpop.xlane.xlu2 %623  ;;  %967 = vmatpush.bf16.msrb.mxu3 %v958_v5 }
 0x16a   : > { %v648_v49 = vsub.f32 %v2068_v33, %v624_v42 }
 0x16b   : > { %v2132_v52 = vpop.eup %1497  ;;  %v673_v46 = vmul.f32 1.442695, %v647_v35  ;;  %v671_v55 = vmul.f32 1.442695, %v646_v41 }
 0x16c   : > { %v2134_v7 = vpop.eup %1499  ;;  %v675_v11 = vmul.f32 1.442695, %v648_v49  ;;  %v730_v19 = vsel %vm588_vm5, %v2132_v52, 0.0 }
 0x16d   : > { %v2138_v20 = vpop.eup %1501  ;;  %1503 = vpow2.f32 %v673_v46  ;;  %731 = vadd.xlane.f32.xlu2 %v730_v19  ;;  %v727_v51 = vsel %vm588_vm5, %v2134_v7, 0.0  ;;  %v910_v46 = vsel %vm789_vm10, %v1959_v0, 0 }
 0x16e   : > { %1505 = vpow2.f32 %v671_v55  ;;  %728 = vadd.xlane.f32.xlu1 %v727_v51  ;;  %v724_v43 = vsel %vm588_vm5, %v2138_v20, 0.0  ;;  %919 = vmatpush.bf16.msrb.mxu1 %v910_v46 }
 0x16f   : > { %1507 = vpow2.f32 %v675_v11  ;;  %725 = vadd.xlane.f32.xlu0 %v724_v43 }
 0x173   : > { %v2144_v33 = vpop.eup %1503 }
 0x174   : > { %v2146_v56 = vpop.eup %1505  ;;  %v715_v54 = vsel %vm588_vm5, %v2144_v33, 0.0 }
 0x175   : > { %v2150_v17 = vpop.eup %1507  ;;  %716 = vadd.xlane.f32.xlu2 %v715_v54  ;;  %v712_v25 = vsel %vm588_vm5, %v2146_v56, 0.0 }
 0x176   : > { %713 = vadd.xlane.f32.xlu1 %v712_v25  ;;  %v718_v12 = vsel %vm588_vm5, %v2150_v17, 0.0 }
 0x177   : > { %719 = vadd.xlane.f32.xlu0 %v718_v12 }
 0x1c1   : > { %v693_v36 = vpop.xlane.xlu0 %692 }
 0x1c2   : > { %v687_v39 = vpop.xlane.xlu1 %686 }
 0x1c3   : > { %1509 = vrcp.f32 %v687_v39 }
 0x1c8   : > { %v705_v40 = vpop.xlane.xlu2 %704 }
 0x1c9   : > { %v699_v62 = vpop.xlane.xlu0 %698  ;;  %v1510_v10 = vpop.eup %1509 }
 0x1ca   : > { %1511 = vrcp.f32 %v699_v62  ;;  %v749_v41 = vmul.f32 %v1510_v10, %v2082_v26 }
 0x1cb   : > { %1513 = vrcp.f32 %v705_v40 }
 0x1cc   : > { %v765_v11 = vpack.c.bf16 %v749_v41, %v749_v41 }
 0x1ce   : > { %v783_v0 = vunpack.c.l.b16 %v765_v11 }
 0x1d0   : > { %v690_v31 = vpop.xlane.xlu2 %689  ;;  %v1512_v32 = vpop.eup %1511 }
 0x1d1   : > { %1515 = vrcp.f32 %v690_v31  ;;  %v702_v4 = vpop.xlane.xlu1 %701  ;;  %v1514_v35 = vpop.eup %1513  ;;  %v753_v42 = vmul.f32 %v1512_v32, %v2093_v50 }
 0x1d2   : > { %1517 = vrcp.f32 %v702_v4  ;;  %v708_v48 = vpop.xlane.xlu0 %707  ;;  %v755_v45 = vmul.f32 %v1514_v35, %v2091_v38 }
 0x1d3   : > { %1519 = vrcp.f32 %v708_v48  ;;  %v769_v43 = vpack.c.bf16 %v753_v42, %v753_v42 }
 0x1d4   : > { %1521 = vrcp.f32 %v693_v36  ;;  %v771_v61 = vpack.c.bf16 %v755_v45, %v755_v45 }
 0x1d5   : > { %v832_v36 = vunpack.c.l.b16 %v769_v43 }
 0x1d6   : > { %v856_v40 = vunpack.c.l.b16 %v771_v61 }
 0x1d7   : > { %v1516_v49 = vpop.eup %1515 }
 0x1d8   : > { %v1518_v55 = vpop.eup %1517  ;;  %v750_v19 = vmul.f32 %v1516_v49, %v2102_v6  ;;  %v723_v51 = vpop.xlane.xlu2 %722 }
 0x1d9   : > { %v1520_v26 = vpop.eup %1519  ;;  %v754_v50 = vmul.f32 %v1518_v55, %v2104_v18  ;;  %v696_v54 = vpop.xlane.xlu1 %695 }
 0x1da   : > { %v1522_v25 = vpop.eup %1521  ;;  %v766_v12 = vpack.c.bf16 %v750_v19, %v750_v19  ;;  %v756_v38 = vmul.f32 %v1520_v26, %v2108_v23  ;;  %1523 = vrcp.f32 %v696_v54  ;;  %v711_v16 = vpop.xlane.xlu0 %710 }
 0x1db   : > { %v770_v29 = vpack.c.bf16 %v754_v50, %v754_v50  ;;  %v751_v6 = vmul.f32 %v1522_v25, %v2080_v24  ;;  %1525 = vrcp.f32 %v723_v51 }
 0x1dc   : > { %v784_v30 = vunpack.c.l.b16 %v766_v12  ;;  %v772_v34 = vpack.c.bf16 %v756_v38, %v756_v38 }
 0x1dd   : > { %v833_v39 = vunpack.c.l.b16 %v770_v29  ;;  %v767_v23 = vpack.c.bf16 %v751_v6, %v751_v6 }
 0x1de   : > { %v785_v62 = vpack.c.b16 %v784_v30, %v783_v0  ;;  %v857_v18 = vunpack.c.l.b16 %v772_v34 }
 0x1df   : > { %v834_v3 = vpack.c.b16 %v833_v39, %v832_v36  ;;  %v808_v41 = vunpack.c.l.b16 %v767_v23 }
 0x1e0   : > { %v1524_v5 = vpop.eup %1523  ;;  %v858_v31 = vpack.c.b16 %v857_v18, %v856_v40  ;;  %v732_v10 = vpop.xlane.xlu2 %731  ;;  %1399 = vmatmul.msk.bf16.vlgmr.msra.gmra.mxu0 %vm588_vm5, %v785_v62 }
 0x1e1   : > { %v752_v4 = vmul.f32 %v1524_v5, %v2119_v37  ;;  %1527 = vrcp.f32 %v732_v10  ;;  %v729_v32 = vpop.xlane.xlu1 %728  ;;  %1401 = vmatmul.msk.bf16.vlgmr.msra.gmra.mxu2 %vm588_vm5, %v834_v3  ;;  %v1526_v48 = vpop.eup %1525 }
 0x1e2   : > { %1529 = vrcp.f32 %v729_v32  ;;  %1402 = vmatmul.msk.bf16.vlgmr.msra.gmra.mxu3 %vm588_vm5, %v858_v31  ;;  %v726_v24 = vpop.xlane.xlu0 %725  ;;  %v761_v44 = vmul.f32 %v1526_v48, %v2117_v28 }
 0x1e3   : > { %v768_v35 = vpack.c.bf16 %v752_v4, %v752_v4  ;;  %1531 = vrcp.f32 %v726_v24 }
 0x1e4   : > { %1533 = vrcp.f32 %v711_v16  ;;  %v777_v43 = vpack.c.bf16 %v761_v44, %v761_v44 }
 0x1e5   : > { %v809_v42 = vunpack.c.l.b16 %v768_v35 }
 0x1e6   : > { %v928_v16 = vunpack.c.l.b16 %v777_v43 }
 0x1e7   : > { %v1528_v45 = vpop.eup %1527  ;;  %v810_v49 = vpack.c.b16 %v809_v42, %v808_v41 }
 0x1e8   : > { %v1530_v46 = vpop.eup %1529  ;;  %v764_v37 = vmul.f32 %v1528_v45, %v2132_v52  ;;  %v717_v55 = vpop.xlane.xlu2 %716 }
 0x1e9   : > { %v1532_v11 = vpop.eup %1531  ;;  %v763_v19 = vmul.f32 %v1530_v46, %v2134_v7  ;;  %1535 = vrcp.f32 %v717_v55  ;;  %v714_v51 = vpop.xlane.xlu1 %713  ;;  %1400 = vmatmul.msk.bf16.vlgmr.msra.gmra.mxu1 %vm588_vm5, %v810_v49 }
 0x1ea   : > { %v1534_v26 = vpop.eup %1533  ;;  %v780_v50 = vpack.c.bf16 %v764_v37, %v764_v37  ;;  %v762_v54 = vmul.f32 %v1532_v11, %v2138_v20  ;;  %1537 = vrcp.f32 %v714_v51  ;;  %v720_v28 = vpop.xlane.xlu0 %719 }
 0x1eb   : > { %v779_v25 = vpack.c.bf16 %v763_v19, %v763_v19  ;;  %1539 = vrcp.f32 %v720_v28  ;;  %v757_v52 = vmul.f32 %v1534_v26, %v2123_v47 }
 0x1ec   : > { %v953_v61 = vunpack.c.l.b16 %v780_v50  ;;  %v778_v12 = vpack.c.bf16 %v762_v54, %v762_v54 }
 0x1ed   : > { %v952_v38 = vunpack.c.l.b16 %v779_v25  ;;  %v773_v39 = vpack.c.bf16 %v757_v52, %v757_v52 }
 0x1ee   : > { %v929_v7 = vunpack.c.l.b16 %v778_v12 }
 0x1ef   : > { %v1536_v29 = vpop.eup %1535  ;;  %v954_v30 = vpack.c.b16 %v953_v61, %v952_v38  ;;  %v880_v3 = vunpack.c.l.b16 %v773_v39 }
 0x1f0   : > { %v1538_v0 = vpop.eup %1537  ;;  %v930_v34 = vpack.c.b16 %v929_v7, %v928_v16  ;;  %v759_v6 = vmul.f32 %v1536_v29, %v2144_v33 }
 0x1f1   : > { %v1540_v36 = vpop.eup %1539  ;;  %v758_v20 = vmul.f32 %v1538_v0, %v2146_v56 }
 0x1f2   : > { %v775_v40 = vpack.c.bf16 %v759_v6, %v759_v6  ;;  %v760_v62 = vmul.f32 %v1540_v36, %v2150_v17  ;;  %1405 = vmatmul.msk.bf16.vlgmr.msrb.gmra.mxu2 %vm588_vm5, %v930_v34  ;;  %1406 = vmatmul.msk.bf16.vlgmr.msrb.gmra.mxu3 %vm588_vm5, %v954_v30 }
 0x1f3   : > { %v774_v47 = vpack.c.bf16 %v758_v20, %v758_v20 }
 0x1f4   : > { %v776_v18 = vpack.c.bf16 %v760_v62, %v760_v62  ;;  %v904_v31 = vunpack.c.l.b16 %v775_v40 }
 0x1f5   : > { %v881_v5 = vunpack.c.l.b16 %v774_v47 }
 0x1f6   : > { %v905_v10 = vunpack.c.l.b16 %v776_v18  ;;  %v1541_v18 = vld [vmem:[%s1834_s0 + $0x10] sm:$0xff] }
 0x1f7   : > { %v882_v23 = vpack.c.b16 %v881_v5, %v880_v3  ;;  %v1542_v5 = vld [vmem:[%s1834_s0] sm:$0xff] }
 0x1f8   : > { %v906_v4 = vpack.c.b16 %v905_v10, %v904_v31 }
 0x1f9   : > { %1403 = vmatmul.msk.bf16.vlgmr.msrb.gmra.mxu0 %vm588_vm5, %v882_v23 }
 0x1fa   : > { %1404 = vmatmul.msk.bf16.vlgmr.msrb.gmra.mxu1 %vm588_vm5, %v906_v4 }
 0x25d   : > { %v801_v33 = vpop.f32.mrf.mxu0 }
 0x25e   : > { %1022 = vrot.lane.b32.xlu1 %v801_v33, %s1692_s20  ;;  %v974_v56 = vmul.f32 %v801_v33, %v1863_v8  ;;  %v990_v48 = vsub.f32 %v1863_v8, %v801_v33 }
 0x264   : > { %v849_v8 = vpop.f32.mrf.mxu2 }
 0x265   : > { %v803_v35 = vpop.f32.mrf.mxu0  ;;  %v873_v49 = vpop.f32.mrf.mxu3  ;;  %v978_v37 = vmul.f32 %v849_v8, %v1881_v15 }
 0x266   : > { %v825_v17 = vpop.f32.mrf.mxu1  ;;  %1086 = vrot.lane.b32.xlu1 %v974_v56, %s1693_s26  ;;  %v975_v44 = vmul.f32 %v803_v35, %v1866_v9  ;;  %v991_v45 = vsub.f32 %v1866_v9, %v803_v35  ;;  %v980_v46 = vmul.f32 %v873_v49, %v1894_v22  ;;  %v994_v9 = vsub.f32 %v1881_v15, %v849_v8 }
 0x267   : > { %v976_v32 = vmul.f32 %v825_v17, %v1875_v13  ;;  %1026 = vrot.lane.b32.xlu0 %v825_v17, %s1692_s20  ;;  %v992_v24 = vsub.f32 %v1875_v13, %v825_v17 }
 0x269   : > { %1090 = vrot.lane.b32.xlu2 %v976_v32, %s1693_s26  ;;  %v1543_v32 = vld [vmem:[%s1834_s0 + $0x8] sm:$0xff] }
 0x26c   : > { %v851_v43 = vpop.f32.mrf.mxu2 }
 0x26d   : > { %v995_v50 = vsub.f32 %v1891_v21, %v851_v43 }
 0x26e   : > { %1154 = vrot.lane.b32.xlu1 %v992_v24, %s1694_s7  ;;  %v827_v41 = vpop.f32.mrf.mxu1 }
 0x26f   : > { %1150 = vrot.lane.b32.xlu0 %v990_v48, %s1694_s7  ;;  %v977_v42 = vmul.f32 %v827_v41, %v1878_v14  ;;  %v993_v13 = vsub.f32 %v1878_v14, %v827_v41  ;;  %v996_v14 = vsub.f32 %v1894_v22, %v873_v49  ;;  %v875_v22 = vpop.f32.mrf.mxu3 }
 0x270   : > { %v997_v25 = vsub.f32 %v1901_v27, %v875_v22 }
 0x271   : > { %1024 = vrot.lane.b32.xlu2 %v803_v35, %s1692_s20 }
 0x275   : > { %v945_v12 = vpop.f32.mrf.mxu2 }
 0x276   : > { %1092 = vrot.lane.b32.xlu1 %v977_v42, %s1693_s26  ;;  %v897_v11 = vpop.f32.mrf.mxu0  ;;  %v986_v52 = vmul.f32 %v945_v12, %v1931_v53  ;;  %v1002_v34 = vsub.f32 %v1931_v53, %v945_v12 }
 0x277   : > { %1088 = vrot.lane.b32.xlu0 %v975_v44, %s1693_s26  ;;  %v921_v55 = vpop.f32.mrf.mxu1  ;;  %v998_v19 = vsub.f32 %v1939_v57, %v897_v11  ;;  %v982_v51 = vmul.f32 %v897_v11, %v1939_v57  ;;  %v979_v57 = vmul.f32 %v851_v43, %v1891_v21  ;;  %v1544_v44 = vld [vmem:[%s1834_s0 + $0x18] sm:$0xff] }
 0x278   : > { %v984_v26 = vmul.f32 %v921_v55, %v1962_v1  ;;  %v1000_v15 = vsub.f32 %v1962_v1, %v921_v55  ;;  %v981_v1 = vmul.f32 %v875_v22, %v1901_v27  ;;  %v969_v27 = vpop.f32.mrf.mxu3 }
 0x279   : > { %1028 = vrot.lane.b32.xlu2 %v827_v41, %s1692_s20  ;;  %v1004_v39 = vsub.f32 %v1950_v60, %v969_v27 }
 0x27d   : > { %v947_v29 = vpop.f32.mrf.mxu2 }
 0x27e   : > { %1030 = vrot.lane.b32.xlu1 %v849_v8, %s1692_s20  ;;  %v899_v54 = vpop.f32.mrf.mxu0  ;;  %v987_v20 = vmul.f32 %v947_v29, %v1947_v59 }
 0x27f   : > { %1156 = vrot.lane.b32.xlu0 %v993_v13, %s1694_s7  ;;  %v983_v28 = vmul.f32 %v899_v54, %v1942_v58  ;;  %v923_v61 = vpop.f32.mrf.mxu1  ;;  %v999_v38 = vsub.f32 %v1942_v58, %v899_v54 }
 0x280   : > { %v1001_v21 = vsub.f32 %v1965_v2, %v923_v61  ;;  %v985_v16 = vmul.f32 %v923_v61, %v1965_v2  ;;  %v971_v0 = vpop.f32.mrf.mxu3  ;;  %v988_v2 = vmul.f32 %v969_v27, %v1950_v60  ;;  %v1003_v60 = vsub.f32 %v1947_v59, %v947_v29 }
 0x281   : > { %1152 = vrot.lane.b32.xlu2 %v991_v45, %s1694_s7  ;;  %v989_v58 = vmul.f32 %v971_v0, %v1957_v63  ;;  %v1005_v47 = vsub.f32 %v1957_v63, %v971_v0 }
 0x286   : > { %1098 = vrot.lane.b32.xlu1 %v980_v46, %s1693_s26 }
 0x287   : > { %1094 = vrot.lane.b32.xlu0 %v978_v37, %s1693_s26 }
 0x289   : > { %1034 = vrot.lane.b32.xlu2 %v873_v49, %s1692_s20 }
 0x28e   : > { %1042 = vrot.lane.b32.xlu1 %v921_v55, %s1692_s20  ;;  %v1545_v55 = vld [vmem:[%s1834_s0 + $0x20] sm:$0xff] }
 0x28f   : > { %1162 = vrot.lane.b32.xlu0 %v996_v14, %s1694_s7 }
 0x291   : > { %1158 = vrot.lane.b32.xlu2 %v994_v9, %s1694_s7 }
 0x296   : > { %1166 = vrot.lane.b32.xlu1 %v998_v19, %s1694_s7 }
 0x297   : > { %1038 = vrot.lane.b32.xlu0 %v897_v11, %s1692_s20 }
 0x299   : > { %1102 = vrot.lane.b32.xlu2 %v982_v51, %s1693_s26 }
 0x29e   : > { %1036 = vrot.lane.b32.xlu1 %v875_v22, %s1692_s20 }
 0x29f   : > { %1106 = vrot.lane.b32.xlu0 %v984_v26, %s1693_s26  ;;  %v1546_v26 = vld [vmem:[%s1834_s0 + $0x30] sm:$0xff] }
 0x2a1   : > { %1170 = vrot.lane.b32.xlu2 %v1000_v15, %s1694_s7 }
 0x2a6   : > { %1160 = vrot.lane.b32.xlu1 %v995_v50, %s1694_s7 }
 0x2a7   : > { %1032 = vrot.lane.b32.xlu0 %v851_v43, %s1692_s20 }
 0x2a9   : > { %1096 = vrot.lane.b32.xlu2 %v979_v57, %s1693_s26 }
 0x2ae   : > { %1104 = vrot.lane.b32.xlu1 %v983_v28, %s1693_s26 }
 0x2af   : > { %1100 = vrot.lane.b32.xlu0 %v981_v1, %s1693_s26 }
 0x2b1   : > { %1164 = vrot.lane.b32.xlu2 %v997_v25, %s1694_s7 }
 0x2b6   : > { %1172 = vrot.lane.b32.xlu1 %v1001_v21, %s1694_s7 }
 0x2b7   : > { %1044 = vrot.lane.b32.xlu0 %v923_v61, %s1692_s20  ;;  %v1547_v61 = vld [vmem:[%s1834_s0 + $0x40] sm:$0xff] }
 0x2b9   : > { %1040 = vrot.lane.b32.xlu2 %v899_v54, %s1692_s20 }
 0x2be   : > { %1110 = vrot.lane.b32.xlu1 %v986_v52, %s1693_s26 }
 0x2bf   : > { %1168 = vrot.lane.b32.xlu0 %v999_v38, %s1694_s7 }
 0x2c1   : > { %1108 = vrot.lane.b32.xlu2 %v985_v16, %s1693_s26  ;;  %v1548_v16 = vld [vmem:[%s1834_s0 + $0x50] sm:$0xff] }
 0x2c3   : > { %v1091_v7 = vpop.permute.xlu2 %1090 }
 0x2c6   : > { %1048 = vrot.lane.b32.xlu1 %v947_v29, %s1692_s20 }
 0x2c7   : > { %1050 = vrot.lane.b32.xlu0 %v969_v27, %s1692_s20 }
 0x2c9   : > { %1046 = vrot.lane.b32.xlu2 %v945_v12, %s1692_s20 }
 0x2cb   : > { %v1025_v30 = vpop.permute.xlu2 %1024 }
 0x2cc   : > { %v1199_v24 = vsel %vm267_vm0, %v1543_v32, %v1025_v30 }
 0x2ce   : > { %1116 = vrot.lane.b32.xlu1 %v989_v58, %s1693_s26 }
 0x2cf   : > { %1174 = vrot.lane.b32.xlu0 %v1002_v34, %s1694_s7 }
 0x2d0   : > { %v1023_v6 = vpop.permute.xlu1 %1022 }
 0x2d1   : > { %1114 = vrot.lane.b32.xlu2 %v988_v2, %s1693_s26  ;;  %v1198_v31 = vsel %vm267_vm0, %v1542_v5, %v1023_v6  ;;  %v1549_v6 = vld [vmem:[%s1834_s0 + $0x28] sm:$0xff] }
 0x2d3   : > { %v1029_v36 = vpop.permute.xlu2 %1028 }
 0x2d4   : > { %v1201_v8 = vsel %vm267_vm0, %v1544_v44, %v1029_v36  ;;  %v1553_v44 = vld [vmem:[%s1834_s0 + $0x60] sm:$0xff] }
 0x2d6   : > { %1178 = vrot.lane.b32.xlu1 %v1004_v39, %s1694_s7 }
 0x2d7   : > { %1112 = vrot.lane.b32.xlu0 %v987_v20, %s1693_s26 }
 0x2d8   : > { %v1087_v53 = vpop.permute.xlu1 %1086 }
 0x2d9   : > { %1052 = vrot.lane.b32.xlu2 %v971_v0, %s1692_s20  ;;  %v1027_v40 = vpop.permute.xlu0 %1026  ;;  %v1215_v4 = vsel %vm1214_vm11, %v1198_v31, %v1087_v53 }
 0x2da   : > { %v1200_v3 = vsel %vm267_vm0, %v1541_v18, %v1027_v40  ;;  %v1550_v40 = vld [vmem:[%s1834_s0 + $0x38] sm:$0xff] }
 0x2db   : > { %v1153_v62 = vpop.permute.xlu2 %1152  ;;  %v1217_v23 = vsel %vm1214_vm11, %v1200_v3, %v1091_v7 }
 0x2df   : > { %1180 = vrot.lane.b32.xlu0 %v1005_v47, %s1694_s7 }
 0x2e0   : > { %v1155_v10 = vpop.permute.xlu1 %1154 }
 0x2e1   : > { %v1234_v63 = vsel %vm1231_vm12, %v1217_v23, %v1155_v10  ;;  %1176 = vrot.lane.b32.xlu2 %v1003_v60, %s1694_s7  ;;  %v1151_v33 = vpop.permute.xlu0 %1150  ;;  %v1551_v10 = vld [vmem:[%s1834_s0 + $0x58] sm:$0xff] }
 0x2e2   : > { %1250 = vst [vmem:[%s2285_s8 + $0x10] sm:$0xff] %v1234_v63  ;;  %v1232_v59 = vsel %vm1231_vm12, %v1215_v4, %v1151_v33 }
 0x2e3   : > { %1248 = vst [vmem:[%s2285_s8] sm:$0xff] %v1232_v59  ;;  %v1035_v56 = vpop.permute.xlu2 %1034  ;;  %v1552_v59 = vld [vmem:[%s1834_s0 + $0x48] sm:$0xff] }
 0x2e4   : > { %v1204_v15 = vsel %vm267_vm0, %v1546_v26, %v1035_v56 }
 0x2e8   : > { %v1093_v17 = vpop.permute.xlu1 %1092 }
 0x2e9   : > { %v1089_v48 = vpop.permute.xlu0 %1088  ;;  %v1218_v45 = vsel %vm1214_vm11, %v1201_v8, %v1093_v17 }
 0x2ea   : > { %v1216_v35 = vsel %vm1214_vm11, %v1199_v24, %v1089_v48 }
 0x2eb   : > { %v1233_v41 = vsel %vm1231_vm12, %v1216_v35, %v1153_v62  ;;  %v1159_v42 = vpop.permute.xlu2 %1158 }
 0x2ec   : > { %1249 = vst [vmem:[%s2285_s8 + $0x8] sm:$0xff] %v1233_v41 }
 0x2f0   : > { %v1031_v13 = vpop.permute.xlu1 %1030 }
 0x2f1   : > { %v1157_v49 = vpop.permute.xlu0 %1156  ;;  %v1202_v9 = vsel %vm267_vm0, %v1545_v55, %v1031_v13 }
 0x2f2   : > { %v1235_v46 = vsel %vm1231_vm12, %v1218_v45, %v1157_v49 }
 0x2f3   : > { %1251 = vst [vmem:[%s2285_s8 + $0x18] sm:$0xff] %v1235_v46  ;;  %v1103_v37 = vpop.permute.xlu2 %1102 }
 0x2f8   : > { %v1099_v14 = vpop.permute.xlu1 %1098 }
 0x2f9   : > { %v1095_v11 = vpop.permute.xlu0 %1094  ;;  %v1221_v50 = vsel %vm1214_vm11, %v1204_v15, %v1099_v14  ;;  %v1554_v14 = vld [vmem:[%s1834_s0 + $0x70] sm:$0xff] }
 0x2fa   : > { %v1219_v19 = vsel %vm1214_vm11, %v1202_v9, %v1095_v11 }
 0x2fb   : > { %v1236_v51 = vsel %vm1231_vm12, %v1219_v19, %v1159_v42  ;;  %v1171_v22 = vpop.permute.xlu2 %1170  ;;  %v1555_v19 = vld [vmem:[%s1834_s0 + $0x68] sm:$0xff] }
 0x2fc   : > { %1252 = vst [vmem:[%s2285_s8 + $0x20] sm:$0xff] %v1236_v51 }
 0x300   : > { %v1043_v43 = vpop.permute.xlu1 %1042 }
 0x301   : > { %v1163_v57 = vpop.permute.xlu0 %1162  ;;  %v1208_v7 = vsel %vm267_vm0, %v1548_v16, %v1043_v43 }
 0x302   : > { %v1238_v54 = vsel %vm1231_vm12, %v1221_v50, %v1163_v57  ;;  %v1556_v57 = vld [vmem:[%s1834_s0 + $0x78] sm:$0xff] }
 0x303   : > { %1254 = vst [vmem:[%s2285_s8 + $0x30] sm:$0xff] %v1238_v54  ;;  %v1097_v28 = vpop.permute.xlu2 %1096 }
 0x308   : > { %v1167_v1 = vpop.permute.xlu1 %1166 }
 0x309   : > { %v1039_v25 = vpop.permute.xlu0 %1038 }
 0x30a   : > { %v1206_v21 = vsel %vm267_vm0, %v1547_v61, %v1039_v25 }
 0x30b   : > { %v1223_v12 = vsel %vm1214_vm11, %v1206_v21, %v1103_v37  ;;  %v1165_v38 = vpop.permute.xlu2 %1164 }
 0x30c   : > { %v1240_v52 = vsel %vm1231_vm12, %v1223_v12, %v1167_v1 }
 0x30d   : > { %1256 = vst [vmem:[%s2285_s8 + $0x40] sm:$0xff] %v1240_v52 }
 0x310   : > { %v1037_v27 = vpop.permute.xlu1 %1036 }
 0x311   : > { %v1107_v29 = vpop.permute.xlu0 %1106  ;;  %v1205_v62 = vsel %vm267_vm0, %v1550_v40, %v1037_v27 }
 0x312   : > { %v1225_v0 = vsel %vm1214_vm11, %v1208_v7, %v1107_v29 }
 0x313   : > { %v1242_v30 = vsel %vm1231_vm12, %v1225_v0, %v1171_v22  ;;  %v1041_v58 = vpop.permute.xlu2 %1040 }
 0x314   : > { %1258 = vst [vmem:[%s2285_s8 + $0x50] sm:$0xff] %v1242_v30  ;;  %v1207_v56 = vsel %vm267_vm0, %v1552_v59, %v1041_v58 }
 0x318   : > { %v1161_v34 = vpop.permute.xlu1 %1160 }
 0x319   : > { %v1033_v2 = vpop.permute.xlu0 %1032 }
 0x31a   : > { %v1203_v36 = vsel %vm267_vm0, %v1549_v6, %v1033_v2 }
 0x31b   : > { %v1220_v39 = vsel %vm1214_vm11, %v1203_v36, %v1097_v28  ;;  %v1109_v18 = vpop.permute.xlu2 %1108 }
 0x31c   : > { %v1237_v20 = vsel %vm1231_vm12, %v1220_v39, %v1161_v34 }
 0x31d   : > { %1253 = vst [vmem:[%s2285_s8 + $0x28] sm:$0xff] %v1237_v20 }
 0x320   : > { %v1105_v53 = vpop.permute.xlu1 %1104 }
 0x321   : > { %v1101_v47 = vpop.permute.xlu0 %1100  ;;  %v1224_v32 = vsel %vm1214_vm11, %v1207_v56, %v1105_v53 }
 0x322   : > { %v1222_v3 = vsel %vm1214_vm11, %v1205_v62, %v1101_v47 }
 0x323   : > { %v1239_v60 = vsel %vm1231_vm12, %v1222_v3, %v1165_v38  ;;  %v1047_v63 = vpop.permute.xlu2 %1046 }
 0x324   : > { %1255 = vst [vmem:[%s2285_s8 + $0x38] sm:$0xff] %v1239_v60  ;;  %v1210_v8 = vsel %vm267_vm0, %v1553_v44, %v1047_v63 }
 0x328   : > { %v1173_v5 = vpop.permute.xlu1 %1172 }
 0x329   : > { %v1045_v31 = vpop.permute.xlu0 %1044 }
 0x32a   : > { %v1209_v23 = vsel %vm267_vm0, %v1551_v10, %v1045_v31 }
 0x32b   : > { %v1226_v4 = vsel %vm1214_vm11, %v1209_v23, %v1109_v18  ;;  %v1115_v35 = vpop.permute.xlu2 %1114 }
 0x32c   : > { %v1243_v33 = vsel %vm1231_vm12, %v1226_v4, %v1173_v5 }
 0x32d   : > { %1259 = vst [vmem:[%s2285_s8 + $0x58] sm:$0xff] %v1243_v33 }
 0x330   : > { %v1111_v17 = vpop.permute.xlu1 %1110 }
 0x331   : > { %v1169_v24 = vpop.permute.xlu0 %1168  ;;  %v1227_v49 = vsel %vm1214_vm11, %v1210_v8, %v1111_v17 }
 0x332   : > { %v1241_v48 = vsel %vm1231_vm12, %v1224_v32, %v1169_v24 }
 0x333   : > { %1257 = vst [vmem:[%s2285_s8 + $0x48] sm:$0xff] %v1241_v48  ;;  %v1053_v13 = vpop.permute.xlu2 %1052 }
 0x334   : > { %v1213_v54 = vsel %vm267_vm0, %v1556_v57, %v1053_v13 }
 0x338   : > { %v1049_v41 = vpop.permute.xlu1 %1048 }
 0x339   : > { %v1051_v42 = vpop.permute.xlu0 %1050  ;;  %v1211_v51 = vsel %vm267_vm0, %v1555_v19, %v1049_v41 }
 0x33a   : > { %v1212_v55 = vsel %vm267_vm0, %v1554_v14, %v1051_v42 }
 0x33b   : > { %v1229_v11 = vsel %vm1214_vm11, %v1212_v55, %v1115_v35  ;;  %v1177_v15 = vpop.permute.xlu2 %1176 }
 0x340   : > { %v1117_v45 = vpop.permute.xlu1 %1116 }
 0x341   : > { %v1175_v46 = vpop.permute.xlu0 %1174  ;;  %v1230_v28 = vsel %vm1214_vm11, %v1213_v54, %v1117_v45 }
 0x342   : > { %v1244_v37 = vsel %vm1231_vm12, %v1227_v49, %v1175_v46 }
 0x343   : > { %1260 = vst [vmem:[%s2285_s8 + $0x60] sm:$0xff] %v1244_v37 }
 0x348   : > { %v1179_v9 = vpop.permute.xlu1 %1178 }
 0x349   : > { %v1246_v22 = vsel %vm1231_vm12, %v1229_v11, %v1179_v9  ;;  %v1113_v26 = vpop.permute.xlu0 %1112 }
 0x34a   : > { %1262 = vst [vmem:[%s2285_s8 + $0x70] sm:$0xff] %v1246_v22  ;;  %v1228_v43 = vsel %vm1214_vm11, %v1211_v51, %v1113_v26 }
 0x34b   : > { %v1245_v50 = vsel %vm1231_vm12, %v1228_v43, %v1177_v15 }
 0x34c   : > { %1261 = vst [vmem:[%s2285_s8 + $0x68] sm:$0xff] %v1245_v50 }
 0x351   : > { %v1181_v1 = vpop.permute.xlu0 %1180 }
 0x352   : > { %v1247_v25 = vsel %vm1231_vm12, %v1230_v28, %v1181_v1 }
 0x353   : > { %1263 = vst [vmem:[%s2285_s8 + $0x78] sm:$0xff] %v1247_v25 }
 0x354   : > { %1644 = shalt.err (!%p1641_p0)
}
 0x355   : > { %s1695_s23 = smov 128   ;;  %s1696_s24 = smov 8  }
 0x356   : > { %1422 = dma.vmem_to_hbm [thread:$0]  (%p1762_p11), %s1279_s13, 2048, %s1281_s29, %s1265_s3, %s1695_s23, %s1695_s23, %s1696_s24  }
 0x357 PF: > { %s1295_s25 = sand.u32 1, %s1675_s9   ;;  %p2405_p1 = scmp.ge.s32.totalorder %s1687_s12, 2 }
 0x358   : > { %s1296_s20 = scalar_lea.sflag [#allocation4], %s1295_s25 }
 0x359   : > { %p1432_p4 = pnand %p2405_p1, %p1766_p12 }
 0x35b   : > { %p1433_p7 = pneg %p1432_p4 }
 0x35d   : > { %1670 = dma.done.wait (%p1433_p7), %s1296_s20, 2048  }
 0x35e   : > { %1672 = vsyncadd (%p1433_p7), %s1296_s20, 4294965248  ;;  %p18_p5 = scmp.ge.s32.totalorder %s1737_s15, 4   ;;  %s2406_s9 = smov %s1679_s10 }
 0x35f   : > { %s2407_s10 = smov %s1683_s11  ;;  %s2408_s11 = smov %s1749_s18 }
 0x360   : > { %s2409_s12 = smov %s1737_s15  ;;  %20 = sbr.rel (!%p18_p5) target bundleno = 9 (0x9), region = 86 }
 0x365   :  { %1302 = vsyncpa [#allocation3], 1 }
 0x366   :  { %1304 = vsyncpa [#allocation3 + $0x1], 1 }
 0x367   :  { %1305 = vsyncpa [#allocation6], 1 }
 0x368   :  { %1307 = vsyncpa [#allocation6 + $0x1], 1 }
 0x369   :  { %1308 = vsyncpa [#allocation4], 1 }
 0x36a   :  { %1310 = vsyncpa [#allocation4 + $0x1], 1 }

</bundles_post_ra>
